<compile_context>
chip_gen: v7x
topology: tpu7x:2x2x1
jax: 0.10.0
libtpu: 0.0.40
codegen_flags: <defaults>
</compile_context>

<pallas_src>
import functools

import jax
import jax.numpy as jnp
from jax.experimental import pallas as pl
from jax.experimental.pallas import tpu as pltpu

BN_EPS = 1e-5
_MASK_VAL = -1e30   # fill value for padded class lanes before softmax
_LANES = 128


def _round_up(n, m):
    return ((n + m - 1) // m) * m


# ----------------------------------------------------------------------------
# Fused Pallas kernel: 3 x (BN -> Linear -> ReLU -> BN -> Linear -> masked
# log_softmax), with the random ('add') head algebraically factored.
# ----------------------------------------------------------------------------
def _fused_causal_kernel(xo_ref, xc_ref, vecs_ref, w1s_ref, w2s_ref, out_ref,
                         *, num_classes):
    xo = xo_ref[...].astype(jnp.float32)       # [B, H]
    xc = xc_ref[...].astype(jnp.float32)       # [B, H]
    b, hdim = xo.shape
    bp = _round_up(b, 8)                       # 8-aligned row offset per head band
    cp = out_ref.shape[-1]                     # padded class width (128)

    # lane-validity mask for the padded class dimension
    col = jax.lax.broadcasted_iota(jnp.int32, (1, cp), 1)
    valid = col < num_classes

    def unpack(idx):
        # packed per-head params: vecs[idx] = [g1; b1; c1; g2; b2; c2]  -> [6, 128]
        v = vecs_ref[idx]
        return (v[0:1, :hdim], v[1:2, :hdim], v[2:3, :hdim],
                v[3:4, :hdim], v[4:5, :hdim], v[5:6, :],
                w1s_ref[idx], w2s_ref[idx])

    def stats(x):
        # biased (training-mode) batch stats, single elementwise pass
        mu = jnp.mean(x, axis=0, keepdims=True)
        var = jnp.mean(x * x, axis=0, keepdims=True) - mu * mu
        return mu, var

    def tail(h, g2, b2, w2, c2):
        # BN2 -> Linear2 -> masked log_softmax over the valid class lanes
        mu2, var2 = stats(h)
        hh = (h - mu2) * jax.lax.rsqrt(var2 + BN_EPS) * g2 + b2
        logits = jnp.dot(hh, w2, preferred_element_type=jnp.float32) + c2
        logits = jnp.where(valid, logits, _MASK_VAL)
        m = jnp.max(logits, axis=-1, keepdims=True)
        s = logits - m
        lse = jnp.log(jnp.sum(jnp.exp(s), axis=-1, keepdims=True))
        return jnp.where(valid, s - lse, 0.0)

    mu_c, var_c = stats(xc)
    mu_o, var_o = stats(xo)

    # ---- context head (params idx 0) on xc --------------------------------
    g1, b1, c1, g2, b2, c2, w1, w2 = unpack(0)
    xh = (xc - mu_c) * jax.lax.rsqrt(var_c + BN_EPS) * g1 + b1
    h = jnp.maximum(jnp.dot(xh, w1, preferred_element_type=jnp.float32) + c1, 0.0)
    out_ref[pl.ds(0, b), :] = tail(h, g2, b2, w2, c2)

    # ---- objects head (params idx 1) on xo ---------------------------------
    g1, b1, c1, g2, b2, c2, w1, w2 = unpack(1)
    xh = (xo - mu_o) * jax.lax.rsqrt(var_o + BN_EPS) * g1 + b1
    h = jnp.maximum(jnp.dot(xh, w1, preferred_element_type=jnp.float32) + c1, 0.0)
    out_ref[pl.ds(bp, b), :] = tail(h, g2, b2, w2, c2)

    # ---- random ('add') head (params idx 2), factored ----------------------
    # BN1 stats of the pairwise mix compose exactly: mu = mu_o + mu_c,
    # var = var_o + var_c, and Linear#1 distributes over the add, so
    #   fc1(bn1(xo_i + xc_j)) = A_i + C_j   with A absorbing b1@w1 + c1.
    g1, b1, c1, g2, b2, c2, w1, w2 = unpack(2)
    s_mix = jax.lax.rsqrt(var_o + var_c + BN_EPS) * g1
    const = jnp.dot(b1, w1, preferred_element_type=jnp.float32) + c1
    a_term = jnp.dot((xo - mu_o) * s_mix, w1,
                     preferred_element_type=jnp.float32) + const          # [B, H]
    c_term = jnp.dot((xc - mu_c) * s_mix, w1,
                     preferred_element_type=jnp.float32)                   # [B, H]
    # row (i*B + j) = relu(A_i + C_j): only the post-ReLU [B*B, H] exists.
    h_mix = jnp.maximum(a_term[:, None, :] + c_term[None, :, :], 0.0)
    h_mix = h_mix.reshape(b * b, hdim)
    out_ref[pl.ds(2 * bp, b * b), :] = tail(h_mix, g2, b2, w2, c2)


# ----------------------------------------------------------------------------
# Wrapper
# ----------------------------------------------------------------------------
@functools.partial(jax.jit, static_argnums=(3,))
def causal_forward(xo, xc, packed, num_classes):
    """Matches Causal.forward(xo, xc) -> (xc_logis, xo_logis, xco_logis)."""
    vecs, w1s, w2s = packed
    b, h = xo.shape
    cp = w2s.shape[-1]
    bp = _round_up(b, 8)
    bbp = _round_up(b * b, 8)
    n_rows = 2 * bp + bbp

    flops = int(2 * b * h * h * 2            # ctx/obj first matmuls
                + 2 * b * h * cp * 2         # ctx/obj second matmuls
                + (2 * b + 1) * h * h * 2    # factored mix-head first matmuls
                + b * b * h * cp * 2)        # mix-head second matmul
    transc = int((2 * b + b * b) * (cp + 2))
    bytes_in = 4 * int(xo.size + xc.size + vecs.size + w1s.size + w2s.size)
    bytes_out = 4 * n_rows * cp
    # generous scratch estimate: mix-head h/hh/logits intermediates + i/o, doubled
    vmem_needed = 4 * (bytes_in + bytes_out) + 16 * b * b * (h + cp) * 4
    vmem_limit = int(min(64 << 20, max(4 << 20, vmem_needed)))

    vmem = pl.BlockSpec(memory_space=pltpu.MemorySpace.VMEM)
    out = pl.pallas_call(
        functools.partial(_fused_causal_kernel, num_classes=num_classes),
        out_shape=jax.ShapeDtypeStruct((n_rows, cp), jnp.float32),
        in_specs=[vmem] * 5,
        out_specs=vmem,
        compiler_params=pltpu.CompilerParams(vmem_limit_bytes=vmem_limit),
        cost_estimate=pl.CostEstimate(flops=flops, transcendentals=transc,
                                      bytes_accessed=bytes_in + bytes_out),
    )(xo, xc, vecs, w1s, w2s)

    xc_logis = out[0:b, :num_classes]
    xo_logis = out[bp:bp + b, :num_classes]
    xco_logis = out[2 * bp:2 * bp + b * b, :num_classes]
    return xc_logis, xo_logis, xco_logis


# ----------------------------------------------------------------------------
# Parameter construction & packing
# ----------------------------------------------------------------------------
def make_readout_params(key, hidden, out_dim):
    k1, k2, k3, k4 = jax.random.split(key, 4)
    return {
        # BatchNorm1d params as initialized in Causal.__init__ (weight=1, bias=1e-4)
        "g1": jnp.ones((1, hidden), jnp.float32),
        "b1": jnp.full((1, hidden), 1e-4, jnp.float32),
        "g2": jnp.ones((1, hidden), jnp.float32),
        "b2": jnp.full((1, hidden), 1e-4, jnp.float32),
        # Linear weights stored as [in, out] (PyTorch weight transposed)
        "w1": jax.random.normal(k1, (hidden, hidden), jnp.float32) * 0.1,
        "c1": jax.random.normal(k2, (1, hidden), jnp.float32) * 0.01,
        "w2": jax.random.normal(k3, (hidden, out_dim), jnp.float32) * 0.1,
        "c2": jax.random.normal(k4, (1, out_dim), jnp.float32) * 0.01,
    }


def pack_params(heads, num_classes, hidden, cp=_LANES):
    """Pack per-head dicts (order: [c, o, co]) into 3 lane-dense stacked slabs."""
    assert hidden <= cp and num_classes <= cp

    def vec_rows(p):
        rows = [jnp.pad(r, ((0, 0), (0, cp - hidden)))
                for r in (p["g1"], p["b1"], p["c1"], p["g2"], p["b2"])]
        rows.append(jnp.pad(p["c2"], ((0, 0), (0, cp - num_classes))))
        return jnp.concatenate(rows, axis=0)                               # [6, CP]

    vecs = jnp.stack([vec_rows(p) for p in heads])                         # [3, 6, CP]
    w1s = jnp.stack([p["w1"] for p in heads])                              # [3, H, H]
    w2s = jnp.stack([jnp.pad(p["w2"], ((0, 0), (0, cp - num_classes)))
                     for p in heads])                                      # [3, H, CP]
    return vecs, w1s, w2s


# ----------------------------------------------------------------------------
# Pure-JAX reference (in-script sanity check)
# ----------------------------------------------------------------------------
def _readout_ref(x, p):
    mu1 = jnp.mean(x, axis=0, keepdims=True)
    var1 = jnp.mean((x - mu1) ** 2, axis=0, keepdims=True)
    xh = (x - mu1) / jnp.sqrt(var1 + BN_EPS) * p["g1"] + p["b1"]
    h = jnp.maximum(xh @ p["w1"] + p["c1"], 0.0)
    mu2 = jnp.mean(h, axis=0, keepdims=True)
    var2 = jnp.mean((h - mu2) ** 2, axis=0, keepdims=True)
    hh = (h - mu2) / jnp.sqrt(var2 + BN_EPS) * p["g2"] + p["b2"]
    logits = hh @ p["w2"] + p["c2"]
    return jax.nn.log_softmax(logits, axis=-1)


if __name__ == "__main__":
    B = 2            # number of graphs (rows of the pooled embeddings)
    HIDDEN = 32      # args.hidden
    NUM_CLASSES = 3  # num_classes

    key = jax.random.PRNGKey(0)
    k_xo, k_xc, k_pc, k_po, k_pco = jax.random.split(key, 5)

    xo = jax.random.normal(k_xo, (B, HIDDEN), jnp.float32)
    xc = jax.random.normal(k_xc, (B, HIDDEN), jnp.float32)

    params = {
        "c": make_readout_params(k_pc, HIDDEN, NUM_CLASSES),    # fc*_c head
        "o": make_readout_params(k_po, HIDDEN, NUM_CLASSES),    # fc*_o head
        "co": make_readout_params(k_pco, HIDDEN, NUM_CLASSES),  # fc*_co head ('add')
    }
    packed = pack_params([params["c"], params["o"], params["co"]],
                         NUM_CLASSES, HIDDEN)

    xc_logis, xo_logis, xco_logis = jax.block_until_ready(
        causal_forward(xo, xc, packed, NUM_CLASSES))

    # sanity check against a pure-JAX reference
    ref_xc = _readout_ref(xc, params["c"])
    ref_xo = _readout_ref(xo, params["o"])
    ref_xco = _readout_ref(
        (xo[:, None, :] + xc[None, :, :]).reshape(B * B, HIDDEN), params["co"])
    assert jnp.allclose(xc_logis, ref_xc, atol=1e-4, rtol=1e-4)
    assert jnp.allclose(xo_logis, ref_xo, atol=1e-4, rtol=1e-4)
    assert jnp.allclose(xco_logis, ref_xco, atol=1e-4, rtol=1e-4)
    assert xc_logis.shape == (B, NUM_CLASSES)
    assert xo_logis.shape == (B, NUM_CLASSES)
    assert xco_logis.shape == (B * B, NUM_CLASSES)

    print("KERNEL_OK")
</pallas_src>

<mosaic_0001>
module attributes {stable_mosaic.version = 11 : i64} {
  func.func @_fused_causal_kernel(%arg0: memref<2x32xf32, #tpu.memory_space<vmem>>, %arg1: memref<2x32xf32, #tpu.memory_space<vmem>>, %arg2: memref<3x6x128xf32, #tpu.memory_space<vmem>>, %arg3: memref<3x32x32xf32, #tpu.memory_space<vmem>>, %arg4: memref<3x32x128xf32, #tpu.memory_space<vmem>>, %arg5: memref<24x128xf32, #tpu.memory_space<vmem>>) attributes {dimension_semantics = [], scalar_prefetch = 0 : i64, scratch_operands = 0 : i64, tpu.core_type = #tpu.core_type<tc>} {
    %c0 = arith.constant 0 : index
    %c0_0 = arith.constant 0 : index
    %0 = vector.load %arg0[%c0, %c0_0] : memref<2x32xf32, #tpu.memory_space<vmem>>, vector<2x32xf32>
    %c0_1 = arith.constant 0 : index
    %c0_2 = arith.constant 0 : index
    %1 = vector.load %arg1[%c0_1, %c0_2] : memref<2x32xf32, #tpu.memory_space<vmem>>, vector<2x32xf32>
    %2 = tpu.iota {dimensions = array<i32: 1>} : vector<1x128xi32>
    %c3_i32 = arith.constant 3 : i32
    %3 = vector.broadcast %c3_i32 : i32 to vector<1x128xi32>
    %4 = arith.cmpi slt, %2, %3 : vector<1x128xi32>
    %cst = arith.constant dense<0.000000e+00> : vector<32xf32>
    %5 = vector.multi_reduction <add>, %1, %cst [0] : vector<2x32xf32> to vector<32xf32>
    %6 = vector.shape_cast %5 : vector<32xf32> to vector<1x32xf32>
    %cst_3 = arith.constant 2.000000e+00 : f32
    %7 = vector.broadcast %cst_3 : f32 to vector<1x32xf32>
    %8 = arith.divf %6, %7 : vector<1x32xf32>
    %9 = arith.mulf %1, %1 : vector<2x32xf32>
    %cst_4 = arith.constant dense<0.000000e+00> : vector<32xf32>
    %10 = vector.multi_reduction <add>, %9, %cst_4 [0] : vector<2x32xf32> to vector<32xf32>
    %11 = vector.shape_cast %10 : vector<32xf32> to vector<1x32xf32>
    %cst_5 = arith.constant 2.000000e+00 : f32
    %12 = vector.broadcast %cst_5 : f32 to vector<1x32xf32>
    %13 = arith.divf %11, %12 : vector<1x32xf32>
    %14 = arith.mulf %8, %8 : vector<1x32xf32>
    %15 = arith.subf %13, %14 : vector<1x32xf32>
    %cst_6 = arith.constant dense<0.000000e+00> : vector<32xf32>
    %16 = vector.multi_reduction <add>, %0, %cst_6 [0] : vector<2x32xf32> to vector<32xf32>
    %17 = vector.shape_cast %16 : vector<32xf32> to vector<1x32xf32>
    %cst_7 = arith.constant 2.000000e+00 : f32
    %18 = vector.broadcast %cst_7 : f32 to vector<1x32xf32>
    %19 = arith.divf %17, %18 : vector<1x32xf32>
    %20 = arith.mulf %0, %0 : vector<2x32xf32>
    %cst_8 = arith.constant dense<0.000000e+00> : vector<32xf32>
    %21 = vector.multi_reduction <add>, %20, %cst_8 [0] : vector<2x32xf32> to vector<32xf32>
    %22 = vector.shape_cast %21 : vector<32xf32> to vector<1x32xf32>
    %cst_9 = arith.constant 2.000000e+00 : f32
    %23 = vector.broadcast %cst_9 : f32 to vector<1x32xf32>
    %24 = arith.divf %22, %23 : vector<1x32xf32>
    %25 = arith.mulf %19, %19 : vector<1x32xf32>
    %26 = arith.subf %24, %25 : vector<1x32xf32>
    %c0_10 = arith.constant 0 : index
    %c0_11 = arith.constant 0 : index
    %c0_12 = arith.constant 0 : index
    %27 = vector.load %arg2[%c0_10, %c0_11, %c0_12] : memref<3x6x128xf32, #tpu.memory_space<vmem>>, vector<1x6x128xf32>
    %28 = vector.shape_cast %27 : vector<1x6x128xf32> to vector<6x128xf32>
    %29 = vector.extract_strided_slice %28 {offsets = [0, 0], sizes = [1, 32], strides = [1, 1]} : vector<6x128xf32> to vector<1x32xf32>
    %30 = vector.extract_strided_slice %28 {offsets = [1, 0], sizes = [1, 32], strides = [1, 1]} : vector<6x128xf32> to vector<1x32xf32>
    %31 = vector.extract_strided_slice %28 {offsets = [2, 0], sizes = [1, 32], strides = [1, 1]} : vector<6x128xf32> to vector<1x32xf32>
    %32 = vector.extract_strided_slice %28 {offsets = [3, 0], sizes = [1, 32], strides = [1, 1]} : vector<6x128xf32> to vector<1x32xf32>
    %33 = vector.extract_strided_slice %28 {offsets = [4, 0], sizes = [1, 32], strides = [1, 1]} : vector<6x128xf32> to vector<1x32xf32>
    %34 = vector.extract_strided_slice %28 {offsets = [5, 0], sizes = [1, 128], strides = [1, 1]} : vector<6x128xf32> to vector<1x128xf32>
    %c0_13 = arith.constant 0 : index
    %c0_14 = arith.constant 0 : index
    %c0_15 = arith.constant 0 : index
    %35 = vector.load %arg3[%c0_13, %c0_14, %c0_15] : memref<3x32x32xf32, #tpu.memory_space<vmem>>, vector<1x32x32xf32>
    %36 = vector.shape_cast %35 : vector<1x32x32xf32> to vector<32x32xf32>
    %c0_16 = arith.constant 0 : index
    %c0_17 = arith.constant 0 : index
    %c0_18 = arith.constant 0 : index
    %37 = vector.load %arg4[%c0_16, %c0_17, %c0_18] : memref<3x32x128xf32, #tpu.memory_space<vmem>>, vector<1x32x128xf32>
    %38 = vector.shape_cast %37 : vector<1x32x128xf32> to vector<32x128xf32>
    %39 = vector.broadcast %8 : vector<1x32xf32> to vector<2x32xf32>
    %40 = arith.subf %1, %39 : vector<2x32xf32>
    %cst_19 = arith.constant 9.99999974E-6 : f32
    %41 = vector.broadcast %cst_19 : f32 to vector<1x32xf32>
    %42 = arith.addf %15, %41 : vector<1x32xf32>
    %43 = math.rsqrt %42 : vector<1x32xf32>
    %44 = vector.broadcast %43 : vector<1x32xf32> to vector<2x32xf32>
    %45 = arith.mulf %40, %44 : vector<2x32xf32>
    %46 = vector.broadcast %29 : vector<1x32xf32> to vector<2x32xf32>
    %47 = arith.mulf %45, %46 : vector<2x32xf32>
    %48 = vector.broadcast %30 : vector<1x32xf32> to vector<2x32xf32>
    %49 = arith.addf %47, %48 : vector<2x32xf32>
    %cst_20 = arith.constant dense<0.000000e+00> : vector<2x32xf32>
    %50 = tpu.matmul %49, %36, %cst_20 {dimension_numbers = #tpu.dot_dimension_numbers<[1], [0], [0], [1], [0, 0, 1, 1], [], []>} : vector<2x32xf32>, vector<32x32xf32>, vector<2x32xf32> -> vector<2x32xf32>
    %51 = vector.broadcast %31 : vector<1x32xf32> to vector<2x32xf32>
    %52 = arith.addf %50, %51 : vector<2x32xf32>
    %cst_21 = arith.constant 0.000000e+00 : f32
    %53 = vector.broadcast %cst_21 : f32 to vector<2x32xf32>
    %54 = arith.maximumf %52, %53 : vector<2x32xf32>
    %cst_22 = arith.constant dense<0.000000e+00> : vector<32xf32>
    %55 = vector.multi_reduction <add>, %54, %cst_22 [0] : vector<2x32xf32> to vector<32xf32>
    %56 = vector.shape_cast %55 : vector<32xf32> to vector<1x32xf32>
    %cst_23 = arith.constant 2.000000e+00 : f32
    %57 = vector.broadcast %cst_23 : f32 to vector<1x32xf32>
    %58 = arith.divf %56, %57 : vector<1x32xf32>
    %59 = arith.mulf %54, %54 : vector<2x32xf32>
    %cst_24 = arith.constant dense<0.000000e+00> : vector<32xf32>
    %60 = vector.multi_reduction <add>, %59, %cst_24 [0] : vector<2x32xf32> to vector<32xf32>
    %61 = vector.shape_cast %60 : vector<32xf32> to vector<1x32xf32>
    %cst_25 = arith.constant 2.000000e+00 : f32
    %62 = vector.broadcast %cst_25 : f32 to vector<1x32xf32>
    %63 = arith.divf %61, %62 : vector<1x32xf32>
    %64 = arith.mulf %58, %58 : vector<1x32xf32>
    %65 = arith.subf %63, %64 : vector<1x32xf32>
    %66 = vector.broadcast %58 : vector<1x32xf32> to vector<2x32xf32>
    %67 = arith.subf %54, %66 : vector<2x32xf32>
    %cst_26 = arith.constant 9.99999974E-6 : f32
    %68 = vector.broadcast %cst_26 : f32 to vector<1x32xf32>
    %69 = arith.addf %65, %68 : vector<1x32xf32>
    %70 = math.rsqrt %69 : vector<1x32xf32>
    %71 = vector.broadcast %70 : vector<1x32xf32> to vector<2x32xf32>
    %72 = arith.mulf %67, %71 : vector<2x32xf32>
    %73 = vector.broadcast %32 : vector<1x32xf32> to vector<2x32xf32>
    %74 = arith.mulf %72, %73 : vector<2x32xf32>
    %75 = vector.broadcast %33 : vector<1x32xf32> to vector<2x32xf32>
    %76 = arith.addf %74, %75 : vector<2x32xf32>
    %cst_27 = arith.constant dense<0.000000e+00> : vector<2x128xf32>
    %77 = tpu.matmul %76, %38, %cst_27 {dimension_numbers = #tpu.dot_dimension_numbers<[1], [0], [0], [1], [0, 0, 1, 1], [], []>} : vector<2x32xf32>, vector<32x128xf32>, vector<2x128xf32> -> vector<2x128xf32>
    %78 = vector.broadcast %34 : vector<1x128xf32> to vector<2x128xf32>
    %79 = arith.addf %77, %78 : vector<2x128xf32>
    %cst_28 = arith.constant -1.000000e+30 : f32
    %80 = vector.shape_cast %4 : vector<1x128xi1> to vector<1x128xi1>
    %81 = vector.broadcast %80 : vector<1x128xi1> to vector<2x128xi1>
    %82 = vector.broadcast %cst_28 : f32 to vector<2x128xf32>
    %83 = arith.select %81, %79, %82 : vector<2x128xi1>, vector<2x128xf32>
    %cst_29 = arith.constant dense<0xFF800000> : vector<2xf32>
    %84 = vector.multi_reduction <maximumf>, %83, %cst_29 [1] : vector<2x128xf32> to vector<2xf32>
    %85 = vector.shape_cast %84 : vector<2xf32> to vector<2x1xf32>
    %86 = vector.broadcast %85 : vector<2x1xf32> to vector<2x128xf32>
    %87 = arith.subf %83, %86 : vector<2x128xf32>
    %88 = math.exp %87 : vector<2x128xf32>
    %cst_30 = arith.constant dense<0.000000e+00> : vector<2xf32>
    %89 = vector.multi_reduction <add>, %88, %cst_30 [1] : vector<2x128xf32> to vector<2xf32>
    %90 = vector.shape_cast %89 : vector<2xf32> to vector<2x1xf32>
    %91 = math.log %90 : vector<2x1xf32>
    %92 = vector.broadcast %91 : vector<2x1xf32> to vector<2x128xf32>
    %93 = arith.subf %87, %92 : vector<2x128xf32>
    %cst_31 = arith.constant 0.000000e+00 : f32
    %94 = vector.shape_cast %4 : vector<1x128xi1> to vector<1x128xi1>
    %95 = vector.broadcast %94 : vector<1x128xi1> to vector<2x128xi1>
    %96 = vector.broadcast %cst_31 : f32 to vector<2x128xf32>
    %97 = arith.select %95, %93, %96 : vector<2x128xi1>, vector<2x128xf32>
    %c0_32 = arith.constant 0 : index
    %c0_33 = arith.constant 0 : index
    %98 = vector.load %arg5[%c0_32, %c0_33] : memref<24x128xf32, #tpu.memory_space<vmem>>, vector<2x128xf32>
    tpu.vector_store %arg5[%c0_32, %c0_33], %97 {strides = array<i32>} : memref<24x128xf32, #tpu.memory_space<vmem>>, vector<2x128xf32>,
    %c1 = arith.constant 1 : index
    %c0_34 = arith.constant 0 : index
    %c0_35 = arith.constant 0 : index
    %99 = vector.load %arg2[%c1, %c0_34, %c0_35] : memref<3x6x128xf32, #tpu.memory_space<vmem>>, vector<1x6x128xf32>
    %100 = vector.shape_cast %99 : vector<1x6x128xf32> to vector<6x128xf32>
    %101 = vector.extract_strided_slice %100 {offsets = [0, 0], sizes = [1, 32], strides = [1, 1]} : vector<6x128xf32> to vector<1x32xf32>
    %102 = vector.extract_strided_slice %100 {offsets = [1, 0], sizes = [1, 32], strides = [1, 1]} : vector<6x128xf32> to vector<1x32xf32>
    %103 = vector.extract_strided_slice %100 {offsets = [2, 0], sizes = [1, 32], strides = [1, 1]} : vector<6x128xf32> to vector<1x32xf32>
    %104 = vector.extract_strided_slice %100 {offsets = [3, 0], sizes = [1, 32], strides = [1, 1]} : vector<6x128xf32> to vector<1x32xf32>
    %105 = vector.extract_strided_slice %100 {offsets = [4, 0], sizes = [1, 32], strides = [1, 1]} : vector<6x128xf32> to vector<1x32xf32>
    %106 = vector.extract_strided_slice %100 {offsets = [5, 0], sizes = [1, 128], strides = [1, 1]} : vector<6x128xf32> to vector<1x128xf32>
    %c1_36 = arith.constant 1 : index
    %c0_37 = arith.constant 0 : index
    %c0_38 = arith.constant 0 : index
    %107 = vector.load %arg3[%c1_36, %c0_37, %c0_38] : memref<3x32x32xf32, #tpu.memory_space<vmem>>, vector<1x32x32xf32>
    %108 = vector.shape_cast %107 : vector<1x32x32xf32> to vector<32x32xf32>
    %c1_39 = arith.constant 1 : index
    %c0_40 = arith.constant 0 : index
    %c0_41 = arith.constant 0 : index
    %109 = vector.load %arg4[%c1_39, %c0_40, %c0_41] : memref<3x32x128xf32, #tpu.memory_space<vmem>>, vector<1x32x128xf32>
    %110 = vector.shape_cast %109 : vector<1x32x128xf32> to vector<32x128xf32>
    %111 = vector.broadcast %19 : vector<1x32xf32> to vector<2x32xf32>
    %112 = arith.subf %0, %111 : vector<2x32xf32>
    %cst_42 = arith.constant 9.99999974E-6 : f32
    %113 = vector.broadcast %cst_42 : f32 to vector<1x32xf32>
    %114 = arith.addf %26, %113 : vector<1x32xf32>
    %115 = math.rsqrt %114 : vector<1x32xf32>
    %116 = vector.broadcast %115 : vector<1x32xf32> to vector<2x32xf32>
    %117 = arith.mulf %112, %116 : vector<2x32xf32>
    %118 = vector.broadcast %101 : vector<1x32xf32> to vector<2x32xf32>
    %119 = arith.mulf %117, %118 : vector<2x32xf32>
    %120 = vector.broadcast %102 : vector<1x32xf32> to vector<2x32xf32>
    %121 = arith.addf %119, %120 : vector<2x32xf32>
    %cst_43 = arith.constant dense<0.000000e+00> : vector<2x32xf32>
    %122 = tpu.matmul %121, %108, %cst_43 {dimension_numbers = #tpu.dot_dimension_numbers<[1], [0], [0], [1], [0, 0, 1, 1], [], []>} : vector<2x32xf32>, vector<32x32xf32>, vector<2x32xf32> -> vector<2x32xf32>
    %123 = vector.broadcast %103 : vector<1x32xf32> to vector<2x32xf32>
    %124 = arith.addf %122, %123 : vector<2x32xf32>
    %cst_44 = arith.constant 0.000000e+00 : f32
    %125 = vector.broadcast %cst_44 : f32 to vector<2x32xf32>
    %126 = arith.maximumf %124, %125 : vector<2x32xf32>
    %cst_45 = arith.constant dense<0.000000e+00> : vector<32xf32>
    %127 = vector.multi_reduction <add>, %126, %cst_45 [0] : vector<2x32xf32> to vector<32xf32>
    %128 = vector.shape_cast %127 : vector<32xf32> to vector<1x32xf32>
    %cst_46 = arith.constant 2.000000e+00 : f32
    %129 = vector.broadcast %cst_46 : f32 to vector<1x32xf32>
    %130 = arith.divf %128, %129 : vector<1x32xf32>
    %131 = arith.mulf %126, %126 : vector<2x32xf32>
    %cst_47 = arith.constant dense<0.000000e+00> : vector<32xf32>
    %132 = vector.multi_reduction <add>, %131, %cst_47 [0] : vector<2x32xf32> to vector<32xf32>
    %133 = vector.shape_cast %132 : vector<32xf32> to vector<1x32xf32>
    %cst_48 = arith.constant 2.000000e+00 : f32
    %134 = vector.broadcast %cst_48 : f32 to vector<1x32xf32>
    %135 = arith.divf %133, %134 : vector<1x32xf32>
    %136 = arith.mulf %130, %130 : vector<1x32xf32>
    %137 = arith.subf %135, %136 : vector<1x32xf32>
    %138 = vector.broadcast %130 : vector<1x32xf32> to vector<2x32xf32>
    %139 = arith.subf %126, %138 : vector<2x32xf32>
    %cst_49 = arith.constant 9.99999974E-6 : f32
    %140 = vector.broadcast %cst_49 : f32 to vector<1x32xf32>
    %141 = arith.addf %137, %140 : vector<1x32xf32>
    %142 = math.rsqrt %141 : vector<1x32xf32>
    %143 = vector.broadcast %142 : vector<1x32xf32> to vector<2x32xf32>
    %144 = arith.mulf %139, %143 : vector<2x32xf32>
    %145 = vector.broadcast %104 : vector<1x32xf32> to vector<2x32xf32>
    %146 = arith.mulf %144, %145 : vector<2x32xf32>
    %147 = vector.broadcast %105 : vector<1x32xf32> to vector<2x32xf32>
    %148 = arith.addf %146, %147 : vector<2x32xf32>
    %cst_50 = arith.constant dense<0.000000e+00> : vector<2x128xf32>
    %149 = tpu.matmul %148, %110, %cst_50 {dimension_numbers = #tpu.dot_dimension_numbers<[1], [0], [0], [1], [0, 0, 1, 1], [], []>} : vector<2x32xf32>, vector<32x128xf32>, vector<2x128xf32> -> vector<2x128xf32>
    %150 = vector.broadcast %106 : vector<1x128xf32> to vector<2x128xf32>
    %151 = arith.addf %149, %150 : vector<2x128xf32>
    %cst_51 = arith.constant -1.000000e+30 : f32
    %152 = vector.shape_cast %4 : vector<1x128xi1> to vector<1x128xi1>
    %153 = vector.broadcast %152 : vector<1x128xi1> to vector<2x128xi1>
    %154 = vector.broadcast %cst_51 : f32 to vector<2x128xf32>
    %155 = arith.select %153, %151, %154 : vector<2x128xi1>, vector<2x128xf32>
    %cst_52 = arith.constant dense<0xFF800000> : vector<2xf32>
    %156 = vector.multi_reduction <maximumf>, %155, %cst_52 [1] : vector<2x128xf32> to vector<2xf32>
    %157 = vector.shape_cast %156 : vector<2xf32> to vector<2x1xf32>
    %158 = vector.broadcast %157 : vector<2x1xf32> to vector<2x128xf32>
    %159 = arith.subf %155, %158 : vector<2x128xf32>
    %160 = math.exp %159 : vector<2x128xf32>
    %cst_53 = arith.constant dense<0.000000e+00> : vector<2xf32>
    %161 = vector.multi_reduction <add>, %160, %cst_53 [1] : vector<2x128xf32> to vector<2xf32>
    %162 = vector.shape_cast %161 : vector<2xf32> to vector<2x1xf32>
    %163 = math.log %162 : vector<2x1xf32>
    %164 = vector.broadcast %163 : vector<2x1xf32> to vector<2x128xf32>
    %165 = arith.subf %159, %164 : vector<2x128xf32>
    %cst_54 = arith.constant 0.000000e+00 : f32
    %166 = vector.shape_cast %4 : vector<1x128xi1> to vector<1x128xi1>
    %167 = vector.broadcast %166 : vector<1x128xi1> to vector<2x128xi1>
    %168 = vector.broadcast %cst_54 : f32 to vector<2x128xf32>
    %169 = arith.select %167, %165, %168 : vector<2x128xi1>, vector<2x128xf32>
    %c8 = arith.constant 8 : index
    %c0_55 = arith.constant 0 : index
    %170 = vector.load %arg5[%c8, %c0_55] : memref<24x128xf32, #tpu.memory_space<vmem>>, vector<2x128xf32>
    tpu.vector_store %arg5[%c8, %c0_55], %169 {strides = array<i32>} : memref<24x128xf32, #tpu.memory_space<vmem>>, vector<2x128xf32>,
    %c2 = arith.constant 2 : index
    %c0_56 = arith.constant 0 : index
    %c0_57 = arith.constant 0 : index
    %171 = vector.load %arg2[%c2, %c0_56, %c0_57] : memref<3x6x128xf32, #tpu.memory_space<vmem>>, vector<1x6x128xf32>
    %172 = vector.shape_cast %171 : vector<1x6x128xf32> to vector<6x128xf32>
    %173 = vector.extract_strided_slice %172 {offsets = [0, 0], sizes = [1, 32], strides = [1, 1]} : vector<6x128xf32> to vector<1x32xf32>
    %174 = vector.extract_strided_slice %172 {offsets = [1, 0], sizes = [1, 32], strides = [1, 1]} : vector<6x128xf32> to vector<1x32xf32>
    %175 = vector.extract_strided_slice %172 {offsets = [2, 0], sizes = [1, 32], strides = [1, 1]} : vector<6x128xf32> to vector<1x32xf32>
    %176 = vector.extract_strided_slice %172 {offsets = [3, 0], sizes = [1, 32], strides = [1, 1]} : vector<6x128xf32> to vector<1x32xf32>
    %177 = vector.extract_strided_slice %172 {offsets = [4, 0], sizes = [1, 32], strides = [1, 1]} : vector<6x128xf32> to vector<1x32xf32>
    %178 = vector.extract_strided_slice %172 {offsets = [5, 0], sizes = [1, 128], strides = [1, 1]} : vector<6x128xf32> to vector<1x128xf32>
    %c2_58 = arith.constant 2 : index
    %c0_59 = arith.constant 0 : index
    %c0_60 = arith.constant 0 : index
    %179 = vector.load %arg3[%c2_58, %c0_59, %c0_60] : memref<3x32x32xf32, #tpu.memory_space<vmem>>, vector<1x32x32xf32>
    %180 = vector.shape_cast %179 : vector<1x32x32xf32> to vector<32x32xf32>
    %c2_61 = arith.constant 2 : index
    %c0_62 = arith.constant 0 : index
    %c0_63 = arith.constant 0 : index
    %181 = vector.load %arg4[%c2_61, %c0_62, %c0_63] : memref<3x32x128xf32, #tpu.memory_space<vmem>>, vector<1x32x128xf32>
    %182 = vector.shape_cast %181 : vector<1x32x128xf32> to vector<32x128xf32>
    %183 = arith.addf %26, %15 : vector<1x32xf32>
    %cst_64 = arith.constant 9.99999974E-6 : f32
    %184 = vector.broadcast %cst_64 : f32 to vector<1x32xf32>
    %185 = arith.addf %183, %184 : vector<1x32xf32>
    %186 = math.rsqrt %185 : vector<1x32xf32>
    %187 = arith.mulf %186, %173 : vector<1x32xf32>
    %cst_65 = arith.constant dense<0.000000e+00> : vector<1x32xf32>
    %188 = tpu.matmul %174, %180, %cst_65 {dimension_numbers = #tpu.dot_dimension_numbers<[1], [0], [0], [1], [0, 0, 1, 1], [], []>} : vector<1x32xf32>, vector<32x32xf32>, vector<1x32xf32> -> vector<1x32xf32>
    %189 = arith.addf %188, %175 : vector<1x32xf32>
    %190 = vector.broadcast %19 : vector<1x32xf32> to vector<2x32xf32>
    %191 = arith.subf %0, %190 : vector<2x32xf32>
    %192 = vector.broadcast %187 : vector<1x32xf32> to vector<2x32xf32>
    %193 = arith.mulf %191, %192 : vector<2x32xf32>
    %cst_66 = arith.constant dense<0.000000e+00> : vector<2x32xf32>
    %194 = tpu.matmul %193, %180, %cst_66 {dimension_numbers = #tpu.dot_dimension_numbers<[1], [0], [0], [1], [0, 0, 1, 1], [], []>} : vector<2x32xf32>, vector<32x32xf32>, vector<2x32xf32> -> vector<2x32xf32>
    %195 = vector.broadcast %189 : vector<1x32xf32> to vector<2x32xf32>
    %196 = arith.addf %194, %195 : vector<2x32xf32>
    %197 = vector.broadcast %8 : vector<1x32xf32> to vector<2x32xf32>
    %198 = arith.subf %1, %197 : vector<2x32xf32>
    %199 = vector.broadcast %187 : vector<1x32xf32> to vector<2x32xf32>
    %200 = arith.mulf %198, %199 : vector<2x32xf32>
    %cst_67 = arith.constant dense<0.000000e+00> : vector<2x32xf32>
    %201 = tpu.matmul %200, %180, %cst_67 {dimension_numbers = #tpu.dot_dimension_numbers<[1], [0], [0], [1], [0, 0, 1, 1], [], []>} : vector<2x32xf32>, vector<32x32xf32>, vector<2x32xf32> -> vector<2x32xf32>
    %202 = vector.shape_cast %196 : vector<2x32xf32> to vector<2x1x32xf32>
    %203 = vector.shape_cast %201 : vector<2x32xf32> to vector<1x2x32xf32>
    %204 = vector.broadcast %202 : vector<2x1x32xf32> to vector<2x2x32xf32>
    %205 = vector.broadcast %203 : vector<1x2x32xf32> to vector<2x2x32xf32>
    %206 = arith.addf %204, %205 : vector<2x2x32xf32>
    %cst_68 = arith.constant 0.000000e+00 : f32
    %207 = vector.broadcast %cst_68 : f32 to vector<2x2x32xf32>
    %208 = arith.maximumf %206, %207 : vector<2x2x32xf32>
    %209 = vector.shape_cast %208 : vector<2x2x32xf32> to vector<4x32xf32>
    %cst_69 = arith.constant dense<0.000000e+00> : vector<32xf32>
    %210 = vector.multi_reduction <add>, %209, %cst_69 [0] : vector<4x32xf32> to vector<32xf32>
    %211 = vector.shape_cast %210 : vector<32xf32> to vector<1x32xf32>
    %cst_70 = arith.constant 4.000000e+00 : f32
    %212 = vector.broadcast %cst_70 : f32 to vector<1x32xf32>
    %213 = arith.divf %211, %212 : vector<1x32xf32>
    %214 = arith.mulf %209, %209 : vector<4x32xf32>
    %cst_71 = arith.constant dense<0.000000e+00> : vector<32xf32>
    %215 = vector.multi_reduction <add>, %214, %cst_71 [0] : vector<4x32xf32> to vector<32xf32>
    %216 = vector.shape_cast %215 : vector<32xf32> to vector<1x32xf32>
    %cst_72 = arith.constant 4.000000e+00 : f32
    %217 = vector.broadcast %cst_72 : f32 to vector<1x32xf32>
    %218 = arith.divf %216, %217 : vector<1x32xf32>
    %219 = arith.mulf %213, %213 : vector<1x32xf32>
    %220 = arith.subf %218, %219 : vector<1x32xf32>
    %221 = vector.broadcast %213 : vector<1x32xf32> to vector<4x32xf32>
    %222 = arith.subf %209, %221 : vector<4x32xf32>
    %cst_73 = arith.constant 9.99999974E-6 : f32
    %223 = vector.broadcast %cst_73 : f32 to vector<1x32xf32>
    %224 = arith.addf %220, %223 : vector<1x32xf32>
    %225 = math.rsqrt %224 : vector<1x32xf32>
    %226 = vector.broadcast %225 : vector<1x32xf32> to vector<4x32xf32>
    %227 = arith.mulf %222, %226 : vector<4x32xf32>
    %228 = vector.broadcast %176 : vector<1x32xf32> to vector<4x32xf32>
    %229 = arith.mulf %227, %228 : vector<4x32xf32>
    %230 = vector.broadcast %177 : vector<1x32xf32> to vector<4x32xf32>
    %231 = arith.addf %229, %230 : vector<4x32xf32>
    %cst_74 = arith.constant dense<0.000000e+00> : vector<4x128xf32>
    %232 = tpu.matmul %231, %182, %cst_74 {dimension_numbers = #tpu.dot_dimension_numbers<[1], [0], [0], [1], [0, 0, 1, 1], [], []>} : vector<4x32xf32>, vector<32x128xf32>, vector<4x128xf32> -> vector<4x128xf32>
    %233 = vector.broadcast %178 : vector<1x128xf32> to vector<4x128xf32>
    %234 = arith.addf %232, %233 : vector<4x128xf32>
    %cst_75 = arith.constant -1.000000e+30 : f32
    %235 = vector.shape_cast %4 : vector<1x128xi1> to vector<1x128xi1>
    %236 = vector.broadcast %235 : vector<1x128xi1> to vector<4x128xi1>
    %237 = vector.broadcast %cst_75 : f32 to vector<4x128xf32>
    %238 = arith.select %236, %234, %237 : vector<4x128xi1>, vector<4x128xf32>
    %cst_76 = arith.constant dense<0xFF800000> : vector<4xf32>
    %239 = vector.multi_reduction <maximumf>, %238, %cst_76 [1] : vector<4x128xf32> to vector<4xf32>
    %240 = vector.shape_cast %239 : vector<4xf32> to vector<4x1xf32>
    %241 = vector.broadcast %240 : vector<4x1xf32> to vector<4x128xf32>
    %242 = arith.subf %238, %241 : vector<4x128xf32>
    %243 = math.exp %242 : vector<4x128xf32>
    %cst_77 = arith.constant dense<0.000000e+00> : vector<4xf32>
    %244 = vector.multi_reduction <add>, %243, %cst_77 [1] : vector<4x128xf32> to vector<4xf32>
    %245 = vector.shape_cast %244 : vector<4xf32> to vector<4x1xf32>
    %246 = math.log %245 : vector<4x1xf32>
    %247 = vector.broadcast %246 : vector<4x1xf32> to vector<4x128xf32>
    %248 = arith.subf %242, %247 : vector<4x128xf32>
    %cst_78 = arith.constant 0.000000e+00 : f32
    %249 = vector.shape_cast %4 : vector<1x128xi1> to vector<1x128xi1>
    %250 = vector.broadcast %249 : vector<1x128xi1> to vector<4x128xi1>
    %251 = vector.broadcast %cst_78 : f32 to vector<4x128xf32>
    %252 = arith.select %250, %248, %251 : vector<4x128xi1>, vector<4x128xf32>
    %c16 = arith.constant 16 : index
    %c0_79 = arith.constant 0 : index
    %253 = vector.load %arg5[%c16, %c0_79] : memref<24x128xf32, #tpu.memory_space<vmem>>, vector<4x128xf32>
    tpu.vector_store %arg5[%c16, %c0_79], %252 {strides = array<i32>} : memref<24x128xf32, #tpu.memory_space<vmem>>, vector<4x128xf32>,
    return
  }
}

</mosaic_0001>

<bundles_post_ra>
// kernel: causal_forward.1
= control target key start
LH: loop header
LB: loop body
LE: loop exit
PB: predicated region body
PF: predicated region fallthrough
CT: control target
= control target key end

     0   :  { %10 = vsyncpa [#allocation3], 0  ;;  %s1658_s0 = inlined_call_operand.hbm [shape: f32[2,32], index: 0, kind: input, shape index: {}]   ;;  %s1659_s1 = inlined_call_operand.vmem [shape: f32[2,32], index: 1, kind: input, shape index: {}]   ;;  %s1660_s2 = inlined_call_operand.hbm [shape: f32[3,6,128], index: 2, kind: input, shape index: {}]   ;;  %s1661_s3 = inlined_call_operand.hbm [shape: f32[3,32,32], index: 3, kind: input, shape index: {}]   ;;  %s1662_s4 = inlined_call_operand.hbm [shape: f32[3,32,128], index: 4, kind: input, shape index: {}]   ;;  %s1663_s5 = inlined_call_operand.vmem [shape: f32[24,128], index: 5, kind: output, shape index: {}]  }
   0x1   :  { %11 = vsyncpa [#allocation5], 0 }
   0x2   :  { %12 = vsyncpa [#allocation8], 0  ;;  %s1390_s18 = smov [#allocation4]   ;;  %s1296_s22 = scalar_lea.hbm %s1660_s2, 384 }
   0x3   :  { %s30_s19 = sshll.u32 %s1390_s18, 4  ;;  %p1297_p0 = scmp.ne.s32.totalorder %s1660_s2, %s1296_s22  ;;  %s31_s19 = int_to_ptr.vmem [resolvable:$true] %s30_s19 }
   0x4   :  { %p1300_p1 = scmp.lt.u32.totalorder %s1296_s22, %s1660_s2 }
   0x6   :  { %p1302_p2 = pnand %p1300_p1, %p1297_p0 }
   0x8   :  { %1305 = shalt.err (!%p1302_p2)
}
   0x9   :  { %s1306_s27 = scalar_lea.vmem %s31_s19, 384  ;;  %p1311_p4 = scmp.lt.s32.totalorder %s31_s19, %s31_s19 }
   0xa   :  { %p1307_p3 = scmp.ne.s32.totalorder %s31_s19, %s1306_s27  ;;  %p1312_p5 = scmp.lt.s32.totalorder %s1306_s27, %s1306_s27 }
   0xc   :  { %p1313_p6 = por %p1312_p5, %p1311_p4 }
   0xe   :  { %p1314_p7 = pnand %p1313_p6, %p1307_p3 }
  0x10   :  { %1317 = shalt.err (!%p1314_p7)
}
  0x11   :  { %s1391_s28 = smov 128   ;;  %s1392_s29 = smov 8  }
  0x12   :  { %36 = dma.hbm_to_vmem [thread:$0]  %s1660_s2, 384, %s31_s19, [#allocation5], %s1391_s28, %s1391_s28, %s1392_s29  }
  0x13   :  { %s1393_s7 = smov [#allocation2]   ;;  %s1394_s9 = smov [#allocation6]  }
  0x14   :  { %s19_s8 = sshll.u32 %s1393_s7, 4  ;;  %s42_s10 = sshll.u32 %s1394_s9, 4  ;;  %s20_s8 = int_to_ptr.vmem [resolvable:$true] %s19_s8  ;;  %s43_s10 = int_to_ptr.vmem [resolvable:$true] %s42_s10 }
  0x15   :  { %s1318_s13 = scalar_lea.hbm %s1658_s0, 32 }
  0x16   :  { %p1319_p8 = scmp.ne.s32.totalorder %s1658_s0, %s1318_s13  ;;  %p1322_p9 = scmp.lt.u32.totalorder %s1318_s13, %s1658_s0 }
  0x18   :  { %p1324_p10 = pnand %p1322_p9, %p1319_p8 }
  0x1a   :  { %1327 = shalt.err (!%p1324_p10)
}
  0x1b   :  { %s1328_s2 = scalar_lea.vmem %s20_s8, 32  ;;  %p1333_p12 = scmp.lt.s32.totalorder %s20_s8, %s20_s8 }
  0x1c   :  { %p1329_p11 = scmp.ne.s32.totalorder %s20_s8, %s1328_s2  ;;  %p1334_p13 = scmp.lt.s32.totalorder %s1328_s2, %s1328_s2 }
  0x1e   :  { %p1335_p0 = por %p1334_p13, %p1333_p12 }
  0x20   :  { %p1336_p1 = pnand %p1335_p0, %p1329_p11 }
  0x22   :  { %1339 = shalt.err (!%p1336_p1)
}
  0x23   :  { %22 = dma.hbm_to_vmem [thread:$0]  %s1658_s0, 32, %s20_s8, [#allocation3]  }
  0x24   :  { %s1340_s22 = scalar_lea.hbm %s1661_s3, 1536 }
  0x25   :  { %p1341_p2 = scmp.ne.s32.totalorder %s1661_s3, %s1340_s22  ;;  %p1344_p3 = scmp.lt.u32.totalorder %s1340_s22, %s1661_s3 }
  0x27   :  { %p1346_p4 = pnand %p1344_p3, %p1341_p2 }
  0x29   :  { %1349 = shalt.err (!%p1346_p4)
}
  0x2a   :  { %s1350_s27 = scalar_lea.vmem %s43_s10, 1536  ;;  %p1355_p6 = scmp.lt.s32.totalorder %s43_s10, %s43_s10 }
  0x2b   :  { %p1351_p5 = scmp.ne.s32.totalorder %s43_s10, %s1350_s27  ;;  %p1356_p7 = scmp.lt.s32.totalorder %s1350_s27, %s1350_s27 }
  0x2d   :  { %p1357_p8 = por %p1356_p7, %p1355_p6 }
  0x2f   :  { %p1358_p9 = pnand %p1357_p8, %p1351_p5 }
  0x31   :  { %1361 = shalt.err (!%p1358_p9)
}
  0x32   :  { %48 = dma.hbm_to_vmem [thread:$0]  %s1661_s3, 1536, %s43_s10, [#allocation5], %s1391_s28, %s1391_s28, %s1392_s29  }
  0x33   :  { %s1395_s6 = smov [#allocation7]   ;;  %s1362_s11 = scalar_lea.hbm %s1662_s4, 1536 }
  0x34   :  { %s54_s7 = sshll.u32 %s1395_s6, 4  ;;  %p1363_p10 = scmp.ne.s32.totalorder %s1662_s4, %s1362_s11  ;;  %s55_s7 = int_to_ptr.vmem [resolvable:$true] %s54_s7 }
  0x35   :  { %p1366_p11 = scmp.lt.u32.totalorder %s1362_s11, %s1662_s4 }
  0x37   :  { %p1368_p12 = pnand %p1366_p11, %p1363_p10 }
  0x39   :  { %1371 = shalt.err (!%p1368_p12)
}
  0x3a   :  { %s1372_s16 = scalar_lea.vmem %s55_s7, 1536  ;;  %p1377_p0 = scmp.lt.s32.totalorder %s55_s7, %s55_s7 }
  0x3b   :  { %p1373_p13 = scmp.ne.s32.totalorder %s55_s7, %s1372_s16  ;;  %p1378_p1 = scmp.lt.s32.totalorder %s1372_s16, %s1372_s16 }
  0x3d   :  { %p1379_p2 = por %p1378_p1, %p1377_p0 }
  0x3f   :  { %p1380_p3 = pnand %p1379_p2, %p1373_p13 }
  0x41   :  { %1383 = shalt.err (!%p1380_p3)
}
  0x42   :  { %60 = dma.hbm_to_vmem [thread:$0]  %s1662_s4, 1536, %s55_s7, [#allocation8], %s1391_s28, %s1391_s28, %s1392_s29  }
  0x43   :  { %1384 = dma.done.wait [#allocation3], 32  }
  0x44   :  { %1385 = vsyncadd [#allocation3], 4294967264 }
  0x45   :  { %1386 = dma.done.wait [#allocation5], 1920  }
  0x46   :  { %1387 = vsyncadd [#allocation5], 4294965376 }
  0x47   :  { %1388 = dma.done.wait [#allocation8], 1536  }
  0x48   :  { %1389 = vsyncadd [#allocation8], 4294965760  ;;  %v1396_v0 = vmov 0.0|0.0   ;;  %vm1397_vm0 = vmmov 0   ;;  %v1398_v1 = vmov 0.0   ;;  %vm78_vm1 = vcmask 254976  }
  0x49   :  { %1213 = vmatprep.subr.bf16.mxu0 %v1396_v0  ;;  %1133 = vmatprep.mubr.msk.f32.mxu0 %vm1397_vm0, %v1398_v1  ;;  %v119_v2 = vld [vmem:[#allocation6] sm:$0xff]  ;;  %v120_v3 = vld [vmem:[#allocation6 + $0x8] sm:$0xff]  ;;  %v121_v4 = vld [vmem:[#allocation6 + $0x10] sm:$0xff]  ;;  %v75_v46 = vlaneseq  ;;  %vm145_vm2 = vcmask 261120   ;;  %vm333_vm4 = vcmask 1041408   ;;  %vm873_vm5 = vcmask 257024  }
  0x4a   :  { %1219 = vmatprep.subr.bf16.mxu1 %v1396_v0  ;;  %1144 = vmatprep.mubr.msk.f32.mxu1 %vm1397_vm0, %v1398_v1  ;;  %v1214_v5 = vpack.c.bf16 %v120_v3, %v119_v2  ;;  %v122_v6 = vld [vmem:[#allocation6 + $0x18] sm:$0xff]  ;;  %v74_v7 = vld [vmem:[%s1659_s1] sm:$0x3]  ;;  %v1509_v54 = vld [vmem:[#allocation4] sm:$0x3f]  ;;  %vm1055_vm6 = vcmask 1043456  }
  0x4b   :  { %v79_v8 = vsel %vm78_vm1, %v74_v7, 0.0  ;;  %v88_v9 = vmul.f32 %v74_v7, %v74_v7  ;;  %v1217_v10 = vpack.c.bf16 %v122_v6, %v121_v4  ;;  %v73_v12 = vld [vmem:[#allocation2] sm:$0x3]  ;;  %v1504_v50 = vshrl.u32 %v75_v46, 7  ;;  %v1516_v59 = vld [vmem:[#allocation4 + $0x8] sm:$0x3f] }
  0x4c   :  { %1215 = vmatpush3.bf16.msra.mxu0 %v1214_v5  ;;  %v80_v11 = vrot.slane %v79_v8, 4  ;;  %v99_v14 = vsel %vm78_vm1, %v73_v12, 0.0  ;;  %v107_v15 = vmul.f32 %v73_v12, %v73_v12  ;;  %v351_v63 = vld [vmem:[#allocation6 + $0x20] sm:$0xff]  ;;  %v352_v2 = vld [vmem:[#allocation6 + $0x28] sm:$0xff] }
  0x4d   :  { %1216 = vmatprep.subr.bf16.mxu0 %v1396_v0  ;;  %v89_v13 = vsel %vm78_vm1, %v88_v9, 0.0  ;;  %v100_v18 = vrot.slane %v99_v14, 4  ;;  %v1507_v53 = vsub.s32 0, %v1504_v50  ;;  %v138_v56 = vsub.s32 1, %v1504_v50  ;;  %v353_v9 = vld [vmem:[#allocation6 + $0x30] sm:$0xff] }
  0x4e   :  { %v81_v16 = vadd.f32 %v80_v11, %v79_v8  ;;  %v90_v17 = vrot.slane %v89_v13, 4  ;;  %v108_v19 = vsel %vm78_vm1, %v107_v15, 0.0  ;;  %v1226_v6 = vpack.c.bf16 %v352_v2, %v351_v63  ;;  %v123_v15 = vld [vmem:[#allocation7] sm:$0xff] }
  0x4f   :  { %v101_v22 = vadd.f32 %v100_v18, %v99_v14  ;;  %v109_v23 = vrot.slane %v108_v19, 4  ;;  %v134_v57 = vrot.slane %v1509_v54, %v1507_v53  ;;  %v139_v62 = vrot.slane %v1509_v54, %v138_v56  ;;  %v125_v18 = vld [vmem:[#allocation7 + $0x10] sm:$0xff] }
  0x50   :  { %1218 = vmatpush3.bf16.msra.mxu0 %v1217_v10  ;;  %v82_v20 = vrot.slane %v81_v16, 2  ;;  %v91_v21 = vadd.f32 %v90_v17, %v89_v13  ;;  %v367_v5 = vrot.slane %v1516_v59, %v1507_v53  ;;  %v354_v10 = vld [vmem:[#allocation6 + $0x38] sm:$0xff]  ;;  %v372_v11 = vrot.slane %v1516_v59, %v138_v56 }
  0x51   :  { %1225 = vmatprep.subr.bf16.mxu0 %v1396_v0  ;;  %v102_v26 = vrot.slane %v101_v22, 2  ;;  %v110_v27 = vadd.f32 %v109_v23, %v108_v19  ;;  %v1229_v13 = vpack.c.bf16 %v354_v10, %v353_v9  ;;  %v126_v19 = vld [vmem:[#allocation7 + $0x18] sm:$0xff]  ;;  %v581_v23 = vld [vmem:[#allocation6 + $0x48] sm:$0xff] }
  0x52   :  { %v83_v24 = vadd.f32 %v82_v20, %v81_v16  ;;  %v92_v25 = vrot.slane %v91_v21, 2  ;;  %v124_v16 = vld [vmem:[#allocation7 + $0x8] sm:$0xff] }
  0x53   :  { %v103_v30 = vadd.f32 %v102_v26, %v101_v22  ;;  %v111_v31 = vrot.slane %v110_v27, 2  ;;  %v1220_v17 = vpack.c.bf16 %v124_v16, %v123_v15  ;;  %v580_v22 = vld [vmem:[#allocation6 + $0x40] sm:$0xff]  ;;  %v583_v26 = vld [vmem:[#allocation6 + $0x58] sm:$0xff] }
  0x54   :  { %v84_v28 = vrot.slane %v83_v24, 1  ;;  %v93_v29 = vadd.f32 %v92_v25, %v91_v21  ;;  %v1223_v21 = vpack.c.bf16 %v126_v19, %v125_v18  ;;  %v582_v25 = vld [vmem:[#allocation6 + $0x50] sm:$0xff] }
  0x55   :  { %v104_v34 = vrot.slane %v103_v30, 1  ;;  %v112_v35 = vadd.f32 %v111_v31, %v110_v27  ;;  %1221 = vmatpush3.bf16.msra.mxu1 %v1220_v17  ;;  %v1540_v27 = vpack.c.bf16 %v583_v26, %v582_v25 }
  0x56   :  { %v85_v32 = vadd.f32 %v84_v28, %v83_v24  ;;  %v94_v33 = vrot.slane %v93_v29, 1  ;;  %1222 = vmatprep.subr.bf16.mxu1 %v1396_v0  ;;  %v1536_v24 = vpack.c.bf16 %v581_v23, %v580_v22  ;;  %v1543_v28 = vld [vmem:[#allocation4 + $0x10] sm:$0x3f] }
  0x57   :  { %v105_v38 = vadd.f32 %v104_v34, %v103_v30  ;;  %v113_v39 = vrot.slane %v112_v35, 1  ;;  %v594_v30 = vrot.slane %v1543_v28, 1  ;;  %v143_v34 = vsub.s32 2, %v1504_v50 }
  0x58   :  { %v87_v36 = vmul.f32 0.5, %v85_v32  ;;  %v95_v37 = vadd.f32 %v94_v33, %v93_v29 }
  0x59   :  { %v106_v42 = vmul.f32 0.5, %v105_v38  ;;  %v114_v43 = vadd.f32 %v113_v39, %v112_v35  ;;  %1224 = vmatpush3.bf16.msra.mxu1 %v1223_v21  ;;  %v144_v35 = vrot.slane %v1509_v54, %v143_v34 }
  0x5a   :  { %v96_v40 = vmul.f32 0.5, %v95_v37  ;;  %v97_v41 = vmul.f32 %v87_v36, %v87_v36  ;;  %v1511_v55 = vsub.f32 %v74_v7, %v87_v36  ;;  %1231 = vmatprep.subr.bf16.mxu1 %v1396_v0 }
  0x5b   :  { %v116_v45 = vmul.f32 %v106_v42, %v106_v42  ;;  %v115_v47 = vmul.f32 0.5, %v114_v43  ;;  %v1518_v60 = vsub.f32 %v73_v12, %v106_v42  ;;  %v377_v42 = vrot.slane %v1516_v59, %v143_v34 }
  0x5c   :  { %v98_v44 = vsub.f32 %v96_v40, %v97_v41 }
  0x5d   :  { %v117_v49 = vsub.f32 %v115_v47, %v116_v45 }
  0x5e   :  { %v128_v48 = vadd.f32 1e-05, %v98_v44 }
  0x5f   :  { %v361_v51 = vadd.f32 1e-05, %v117_v49  ;;  %v589_v52 = vadd.f32 %v117_v49, %v98_v44 }
  0x60   :  { %1272 = vrsqrt.f32 %v128_v48 }
  0x61   :  { %1274 = vrsqrt.f32 %v361_v51  ;;  %v590_v20 = vadd.f32 1e-05, %v589_v52 }
  0x63   :  { %1276 = vrsqrt.f32 %v590_v20 }
  0x6a   :  { %v1273_v58 = vpop.eup %1272 }
  0x6b   :  { %v130_v61 = vmul.f32 %v1273_v58, %v1511_v55  ;;  %v1275_v3 = vpop.eup %1274 }
  0x6c   :  { %v363_v7 = vmul.f32 %v1275_v3, %v1518_v60 }
  0x6d   :  { %v135_v4 = vmul.f32 %v134_v57, %v130_v61  ;;  %v1277_v29 = vpop.eup %1276 }
  0x6e   :  { %v368_v12 = vmul.f32 %v367_v5, %v363_v7  ;;  %v592_v31 = vmul.f32 %v1277_v29, %v1543_v28 }
  0x6f   :  { %v140_v8 = vadd.f32 %v139_v62, %v135_v4 }
  0x70   :  { %v373_v14 = vadd.f32 %v372_v11, %v368_v12  ;;  %v1554_v32 = vrot.slane %v592_v31, %v1507_v53 }
  0x71   :  { %1134 = vmatmul.mubr.msk.f32.vlgmr.msra.gmra.mrb[0].mxu0 %vm145_vm2, %v140_v8 }
  0x72   :  { %1227 = vmatpush3.bf16.msra.mxu0 %v1226_v6  ;;  %1155 = vmatprep.mubr.msk.f32.mxu0 %vm1397_vm0, %v1398_v1  ;;  %v751_v33 = vmul.f32 %v1554_v32, %v1511_v55 }
  0x73   :  { %1228 = vmatprep.subr.bf16.mxu0 %v1396_v0 }
  0x76   :  { %1230 = vmatpush3.bf16.msra.mxu0 %v1229_v13 }
  0x77   :  { %1237 = vmatprep.subr.bf16.mxu0 %v1396_v0 }
  0x79   :  { %1156 = vmatmul.mubr.msk.f32.vlgmr.msra.gmra.mrb[2].mxu0 %vm145_vm2, %v373_v14 }
  0x7a   :  { %1177 = vmatprep.mubr.msk.f32.mxu0 %vm1397_vm0, %v1398_v1  ;;  %1239 = vmatpush3.bf16.msra.mxu0 %v1536_v24 }
  0x7b   :  { %1240 = vmatprep.subr.bf16.mxu0 %v1396_v0 }
  0x7e   :  { %1242 = vmatpush3.bf16.msra.mxu0 %v1540_v27 }
  0x7f   :  { %1249 = vmatprep.subr.bf16.mxu0 %v1396_v0 }
  0x81   :  { %1178 = vmatmul.mubr.msk.f32.vlgmr.msra.gmra.mrb[4].mxu0 %vm145_vm2, %v594_v30  ;;  %v1568_v30 = vsub.s32 3, %v1504_v50 }
  0x82   :  { %1251 = vmatpush3.bf16.msra.mxu0 %v1536_v24  ;;  %1199 = vmatprep.mubr.msk.f32.mxu0 %vm1397_vm0, %v1398_v1 }
  0x83   :  { %1252 = vmatprep.subr.bf16.mxu0 %v1396_v0 }
  0x86   :  { %1254 = vmatpush3.bf16.msra.mxu0 %v1540_v27 }
  0x89   :  { %1200 = vmatmul.mubr.msk.f32.vlgmr.msra.gmra.mrb[6].mxu0 %vm145_vm2, %v751_v33  ;;  %v1571_v33 = vsub.s32 4, %v1504_v50 }
 0x144   :  { %v215_v36 = vpop.f32.mrb[0].mxu0 }
 0x145   :  { %v216_v37 = vadd.f32 %v215_v36, %v144_v35  ;;  %v1135_v38 = vpop.f32.mrb[1].mxu0  ;;  %v246_v36 = vrot.slane %v1509_v54, %v1568_v30 }
 0x147   :  { %v219_v39 = vmax.f32 %v216_v37, 0.0 }
 0x149   :  { %v220_v40 = vsel %vm78_vm1, %v219_v39, 0.0  ;;  %v228_v41 = vmul.f32 %v219_v39, %v219_v39 }
 0x14a   :  { %v221_v43 = vrot.slane %v220_v40, 4 }
 0x14b   :  { %v229_v44 = vsel %vm78_vm1, %v228_v41, 0.0  ;;  %v356_v41 = vld [vmem:[#allocation7 + $0x20] sm:$0xff] }
 0x14c   :  { %v222_v45 = vadd.f32 %v221_v43, %v220_v40  ;;  %v230_v47 = vrot.slane %v229_v44, 4  ;;  %v447_v48 = vpop.f32.mrb[2].mxu0  ;;  %v251_v40 = vrot.slane %v1509_v54, %v1571_v33 }
 0x14d   :  { %v448_v49 = vadd.f32 %v447_v48, %v377_v42  ;;  %v1157_v51 = vpop.f32.mrb[3].mxu0  ;;  %v357_v42 = vld [vmem:[#allocation7 + $0x28] sm:$0xff]  ;;  %v359_v48 = vld [vmem:[#allocation7 + $0x38] sm:$0xff] }
 0x14e   :  { %v223_v52 = vrot.slane %v222_v45, 2  ;;  %v231_v55 = vadd.f32 %v230_v47, %v229_v44  ;;  %v1232_v44 = vpack.c.bf16 %v357_v42, %v356_v41  ;;  %v358_v47 = vld [vmem:[#allocation7 + $0x30] sm:$0xff] }
 0x14f   :  { %v451_v56 = vmax.f32 %v448_v49, 0.0  ;;  %v1235_v51 = vpack.c.bf16 %v359_v48, %v358_v47 }
 0x150   :  { %v224_v57 = vadd.f32 %v223_v52, %v222_v45  ;;  %v232_v58 = vrot.slane %v231_v55, 2 }
 0x151   :  { %v452_v61 = vsel %vm78_vm1, %v451_v56, 0.0  ;;  %v460_v62 = vmul.f32 %v451_v56, %v451_v56 }
 0x152   :  { %v225_v63 = vrot.slane %v224_v57, 1  ;;  %v233_v2 = vadd.f32 %v232_v58, %v231_v55  ;;  %v453_v3 = vrot.slane %v452_v61, 4 }
 0x153   :  { %v461_v4 = vsel %vm78_vm1, %v460_v62, 0.0 }
 0x154   :  { %v226_v5 = vadd.f32 %v225_v63, %v224_v57  ;;  %v234_v6 = vrot.slane %v233_v2, 1  ;;  %v454_v7 = vadd.f32 %v453_v3, %v452_v61  ;;  %v462_v8 = vrot.slane %v461_v4, 4  ;;  %v665_v62 = vpop.f32.mrb[4].mxu0  ;;  %v585_v3 = vld [vmem:[#allocation7 + $0x40] sm:$0xff] }
 0x155   :  { %v483_v57 = vrot.slane %v1516_v59, %v1571_v33  ;;  %v673_v61 = vmul.f32 %v1554_v32, %v1518_v60  ;;  %v1179_v63 = vpop.f32.mrb[5].mxu0  ;;  %v587_v60 = vld [vmem:[#allocation7 + $0x50] sm:$0xff]  ;;  %v588_v32 = vld [vmem:[#allocation7 + $0x58] sm:$0xff] }
 0x156   :  { %v227_v9 = vmul.f32 0.5, %v226_v5  ;;  %v235_v10 = vadd.f32 %v234_v6, %v233_v2  ;;  %v455_v11 = vrot.slane %v454_v7, 2  ;;  %v463_v12 = vadd.f32 %v462_v8, %v461_v4  ;;  %v586_v4 = vld [vmem:[#allocation7 + $0x48] sm:$0xff] }
 0x157   :  { %v1256_v5 = vpack.c.bf16 %v586_v4, %v585_v3  ;;  %v1600_v6 = vsub.s32 5, %v1504_v50 }
 0x158   :  { %v236_v13 = vmul.f32 0.5, %v235_v10  ;;  %v237_v14 = vmul.f32 %v227_v9, %v227_v9  ;;  %v456_v15 = vadd.f32 %v455_v11, %v454_v7  ;;  %v464_v16 = vrot.slane %v463_v12, 2 }
 0x159   :  { %v239_v35 = vsub.f32 %v219_v39, %v227_v9  ;;  %v478_v39 = vrot.slane %v1516_v59, %v1568_v30  ;;  %v1603_v7 = vand.u32 127, %v75_v46  ;;  %v488_v46 = vrot.slane %v1516_v59, %v1600_v6 }
 0x15a   :  { %v238_v17 = vsub.f32 %v236_v13, %v237_v14  ;;  %v457_v18 = vrot.slane %v456_v15, 1  ;;  %v465_v19 = vadd.f32 %v464_v16, %v463_v12  ;;  %v595_v12 = vrot.slane %v1543_v28, 2 }
 0x15b   :  { %vm77_vm3 = vcmp.lt.s32.totalorder %v1603_v7, 3 }
 0x15c   :  { %v240_v20 = vadd.f32 1e-05, %v238_v17  ;;  %v458_v21 = vadd.f32 %v457_v18, %v456_v15  ;;  %v466_v22 = vrot.slane %v465_v19, 1  ;;  %v666_v17 = vadd.f32 %v665_v62, %v595_v12 }
 0x15d   :  { %v937_v12 = vrot.slane %v1543_v28, %v1568_v30 }
 0x15e   :  { %1278 = vrsqrt.f32 %v240_v20  ;;  %v459_v23 = vmul.f32 0.5, %v458_v21  ;;  %v467_v25 = vadd.f32 %v466_v22, %v465_v19  ;;  %v677_v21 = vrot.slane %v666_v17, %v1507_v53 }
 0x160   :  { %v469_v26 = vmul.f32 %v459_v23, %v459_v23  ;;  %v468_v29 = vmul.f32 0.5, %v467_v25  ;;  %v471_v49 = vsub.f32 %v451_v56, %v459_v23 }
 0x162   :  { %v470_v31 = vsub.f32 %v468_v29, %v469_v26 }
 0x164   :  { %v472_v34 = vadd.f32 1e-05, %v470_v31 }
 0x166   :  { %1280 = vrsqrt.f32 %v472_v34  ;;  %v1400_v34 = vmov 1983009808  }
 0x168   :  { %v1279_v37 = vpop.eup %1278 }
 0x169   :  { %v242_v38 = vmul.f32 %v1279_v37, %v239_v35  ;;  %v866_v35 = vunpack.c.l.s4 %v1400_v34 }
 0x16b   :  { %v247_v43 = vmul.f32 %v246_v36, %v242_v38  ;;  %v867_v41 = vunpack.c.0.s8 %v866_v35 }
 0x16d   :  { %v252_v45 = vadd.f32 %v251_v40, %v247_v43 }
 0x16f   :  { %1145 = vmatmul.mubr.msk.f32.vlgmr.msra.gmra.mrb[0].mxu1 %vm145_vm2, %v252_v45  ;;  %v870_v45 = vsub.s32 %v867_v41, %v1504_v50  ;;  %v971_v41 = vrot.slane %v1543_v28, %v1600_v6 }
 0x170   :  { %1233 = vmatpush3.bf16.msra.mxu1 %v1232_v44  ;;  %1166 = vmatprep.mubr.msk.f32.mxu1 %vm1397_vm0, %v1398_v1  ;;  %v1281_v52 = vpop.eup %1280 }
 0x171   :  { %1234 = vmatprep.subr.bf16.mxu1 %v1396_v0  ;;  %v474_v55 = vmul.f32 %v1281_v52, %v471_v49 }
 0x173   :  { %v479_v58 = vmul.f32 %v478_v39, %v474_v55 }
 0x174   :  { %1236 = vmatpush3.bf16.msra.mxu1 %v1235_v51 }
 0x175   :  { %1243 = vmatprep.subr.bf16.mxu1 %v1396_v0  ;;  %v484_v56 = vadd.f32 %v483_v57, %v479_v58 }
 0x177   :  { %1167 = vmatmul.mubr.msk.f32.vlgmr.msra.gmra.mrb[2].mxu1 %vm145_vm2, %v484_v56 }
 0x178   :  { %1245 = vmatpush3.bf16.msra.mxu1 %v1536_v24  ;;  %1188 = vmatprep.mubr.msk.f32.mxu1 %vm1397_vm0, %v1398_v1  ;;  %v821_v24 = vpop.f32.mrb[6].mxu0 }
 0x179   :  { %1246 = vmatprep.subr.bf16.mxu1 %v1396_v0  ;;  %v1201_v2 = vpop.f32.mrb[7].mxu0 }
 0x17c   :  { %1248 = vmatpush3.bf16.msra.mxu1 %v1540_v27  ;;  %v1259_v27 = vpack.c.bf16 %v588_v32, %v587_v60 }
 0x17d   :  { %1255 = vmatprep.subr.bf16.mxu1 %v1396_v0 }
 0x17f   :  { %1189 = vmatmul.mubr.msk.f32.vlgmr.msra.gmra.mrb[4].mxu1 %vm145_vm2, %v673_v61 }
 0x180   :  { %1210 = vmatprep.mubr.msk.f32.mxu1 %vm1397_vm0, %v1398_v1  ;;  %1257 = vmatpush3.bf16.msra.mxu1 %v1256_v5  ;;  %v256_v1 = vrot.slane %v1509_v54, %v1600_v6  ;;  %v1399_v54 = vmov 1966171168  }
 0x181   :  { %1258 = vmatprep.subr.bf16.mxu1 %v1396_v0  ;;  %v827_v13 = vunpack.c.l.s4 %v1399_v54  ;;  %v954_v54 = vrot.slane %v1543_v28, %v1571_v33 }
 0x183   :  { %v828_v19 = vunpack.c.0.s8 %v827_v13  ;;  %v945_v13 = vrot.slane %v937_v12, %v870_v45 }
 0x184   :  { %1260 = vmatpush3.bf16.msra.mxu1 %v1259_v27 }
 0x185   :  { %v831_v59 = vsub.s32 %v828_v19, %v1504_v50 }
 0x242   :  { %v326_v8 = vpop.f32.mrb[0].mxu1 }
 0x243   :  { %v327_v9 = vadd.f32 %v326_v8, %v256_v1  ;;  %v1146_v10 = vpop.f32.mrb[1].mxu1 }
 0x245   :  { %v1610_v0 = vsel %vm77_vm3, %v327_v9, -1e+30 }
 0x246   :  { %v334_v11 = vsel %vm333_vm4, %v1610_v0, -inf }
 0x247   :  { %335 = vmax.xlane.f32.xlu0 %v334_v11 }
 0x24a   :  { %v558_v14 = vpop.f32.mrb[2].mxu1 }
 0x24b   :  { %v559_v15 = vadd.f32 %v558_v14, %v488_v46  ;;  %v1168_v16 = vpop.f32.mrb[3].mxu1 }
 0x24c   :  { %v962_v16 = vrot.slane %v954_v54, %v870_v45 }
 0x24d   :  { %v1619_v18 = vsel %vm77_vm3, %v559_v15, -1e+30 }
 0x24e   :  { %v563_v20 = vsel %vm333_vm4, %v1619_v18, -inf }
 0x24f   :  { %564 = vmax.xlane.f32.xlu0 %v563_v20  ;;  %v946_v20 = vcombine.high %v945_v13, %v945_v13 }
 0x252   :  { %v747_v22 = vpop.f32.mrb[4].mxu1 }
 0x253   :  { %v748_v23 = vadd.f32 %v747_v22, %v677_v21  ;;  %v1190_v25 = vpop.f32.mrb[5].mxu1  ;;  %v963_v22 = vcombine.high %v962_v16, %v962_v16 }
 0x255   :  { %v832_v26 = vrot.slane %v748_v23, %v831_v59 }
 0x257   :  { %v833_v29 = vcombine.high %v832_v26, %v832_v26  ;;  %v840_v31 = vrot.slane %v832_v26, %v831_v59 }
 0x259   :  { %v847_v36 = vrot.slane %v833_v29, %v831_v59  ;;  %v851_v37 = vrot.slane %v840_v31, %v1507_v53 }
 0x25b   :  { %v855_v38 = vrot.slane %v847_v36, %v1507_v53  ;;  %v858_v40 = vadd.f32 %v851_v37, %v821_v24 }
 0x25d   :  { %v859_v42 = vadd.f32 %v855_v38, %v821_v24  ;;  %v860_v43 = vmax.f32 %v858_v40, 0.0 }
 0x25f   :  { %v861_v44 = vmax.f32 %v859_v42, 0.0  ;;  %v883_v48 = vmul.f32 %v860_v43, %v860_v43 }
 0x261   :  { %v864_v47 = vcombine.low %v860_v43, %v861_v44  ;;  %v884_v49 = vmul.f32 %v861_v44, %v861_v44 }
 0x263   :  { %v871_v39 = vrot.slane %v864_v47, %v870_v45  ;;  %v887_v51 = vcombine.low %v883_v48, %v884_v49 }
 0x265   :  { %v874_v52 = vsel %vm873_vm5, %v871_v39, 0.0  ;;  %v894_v55 = vrot.slane %v887_v51, %v870_v45 }
 0x266   :  { %v875_v57 = vrot.slane %v874_v52, 4 }
 0x267   :  { %v896_v58 = vsel %vm873_vm5, %v894_v55, 0.0 }
 0x268   :  { %v876_v56 = vadd.f32 %v875_v57, %v874_v52  ;;  %v897_v61 = vrot.slane %v896_v58, 4 }
 0x26a   :  { %v877_v53 = vrot.slane %v876_v56, 2  ;;  %v898_v62 = vadd.f32 %v897_v61, %v896_v58 }
 0x26c   :  { %v878_v63 = vadd.f32 %v877_v53, %v876_v56  ;;  %v899_v24 = vrot.slane %v898_v62, 2 }
 0x26e   :  { %v879_v2 = vrot.slane %v878_v63, 1  ;;  %v900_v3 = vadd.f32 %v899_v24, %v898_v62 }
 0x270   :  { %v880_v4 = vadd.f32 %v879_v2, %v878_v63  ;;  %v901_v50 = vrot.slane %v900_v3, 1 }
 0x272   :  { %v882_v5 = vmul.f32 0.25, %v880_v4  ;;  %v902_v60 = vadd.f32 %v901_v50, %v900_v3 }
 0x274   :  { %v903_v32 = vmul.f32 0.25, %v902_v60  ;;  %v904_v27 = vmul.f32 %v882_v5, %v882_v5  ;;  %v913_v1 = vrot.slane %v882_v5, %v870_v45 }
 0x276   :  { %v905_v8 = vsub.f32 %v903_v32, %v904_v27  ;;  %v914_v9 = vcombine.high %v913_v1, %v913_v1  ;;  %v917_v10 = vsub.f32 %v860_v43, %v913_v1 }
 0x278   :  { %v918_v11 = vsub.f32 %v861_v44, %v914_v9  ;;  %v919_v46 = vadd.f32 1e-05, %v905_v8 }
 0x27a   :  { %1282 = vrsqrt.f32 %v919_v46 }
 0x284   :  { %v1283_v14 = vpop.eup %1282 }
 0x285   :  { %v928_v15 = vrot.slane %v1283_v14, %v870_v45 }
 0x287   :  { %v929_v17 = vcombine.high %v928_v15, %v928_v15  ;;  %v932_v19 = vmul.f32 %v928_v15, %v917_v10 }
 0x289   :  { %v933_v21 = vmul.f32 %v929_v17, %v918_v11  ;;  %v949_v59 = vmul.f32 %v945_v13, %v932_v19 }
 0x28b   :  { %v950_v23 = vmul.f32 %v946_v20, %v933_v21  ;;  %v966_v25 = vadd.f32 %v962_v16, %v949_v59 }
 0x28d   :  { %v967_v26 = vadd.f32 %v963_v22, %v950_v23 }
 0x28f   :  { %v974_v29 = vcombine.low %v966_v25, %v967_v26 }
 0x291   :  { %v981_v31 = vrot.slane %v974_v29, %v870_v45 }
 0x293   :  { %1211 = vmatmul.mubr.msk.f32.vlgmr.msra.gmra.mrb[6].mxu1 %vm145_vm2, %v981_v31 }
 0x2d4   :  { %v336_v30 = vpop.xlane.xlu0 %335 }
 0x2d5   :  { %v337_v38 = vsub.f32 %v1610_v0, %v336_v30 }
 0x2d7   :  { %v338_v40 = vmul.f32 1.442695, %v337_v38 }
 0x2dc   :  { %v565_v34 = vpop.xlane.xlu0 %564 }
 0x2dd   :  { %v566_v33 = vsub.f32 %v1619_v18, %v565_v34 }
 0x2df   :  { %v567_v35 = vmul.f32 1.442695, %v566_v33 }
 0x2e1   :  { %1284 = vpow2.f32 %v567_v35 }
 0x2e2   :  { %1286 = vpow2.f32 %v338_v40 }
 0x2eb   :  { %v1285_v36 = vpop.eup %1284 }
 0x2ec   :  { %v569_v37 = vsel %vm333_vm4, %v1285_v36, 0.0  ;;  %v1287_v47 = vpop.eup %1286 }
 0x2ed   :  { %570 = vadd.xlane.f32.xlu0 %v569_v37  ;;  %v340_v48 = vsel %vm333_vm4, %v1287_v47, 0.0 }
 0x366   :  { %v1050_v42 = vpop.f32.mrb[6].mxu1 }
 0x367   :  { %v1051_v43 = vadd.f32 %v1050_v42, %v971_v41  ;;  %v1212_v44 = vpop.f32.mrb[7].mxu1 }
 0x369   :  { %v1054_v18 = vsel %vm77_vm3, %v1051_v43, -1e+30 }
 0x36a   :  { %v1056_v45 = vsel %vm1055_vm6, %v1054_v18, -inf }
 0x36b   :  { %1057 = vmax.xlane.f32.xlu1 %v1056_v45 }
 0x36f   :  { %341 = vadd.xlane.f32.xlu1 %v340_v48 }
 0x37a   :  { %v571_v0 = vpop.xlane.xlu0 %570 }
 0x37b   :  { %1288 = vlog2.f32 %v571_v0 }
 0x385   :  { %v1289_v49 = vpop.eup %1288 }
 0x386   :  { %v573_v39 = vmul.f32 0.6931472, %v1289_v49 }
 0x388   :  { %v574_v51 = vsub.f32 %v566_v33, %v573_v39 }
 0x38a   :  { %v575_v28 = vsel %vm77_vm3, %v574_v51, 0.0 }
 0x38b   :  { %576 = vst [vmem:[%s1663_s5 + $0x8] sm:$0x3] %v575_v28 }
 0x3f8   :  { %v1058_v6 = vpop.xlane.xlu1 %1057 }
 0x3f9   :  { %v1059_v52 = vsub.f32 %v1054_v18, %v1058_v6 }
 0x3fb   :  { %v1060_v55 = vmul.f32 1.442695, %v1059_v52 }
 0x3fc   :  { %v342_v57 = vpop.xlane.xlu1 %341 }
 0x3fd   :  { %1290 = vpow2.f32 %v1060_v55 }
 0x3fe   :  { %1292 = vlog2.f32 %v342_v57 }
 0x407   :  { %v1291_v58 = vpop.eup %1290 }
 0x408   :  { %v1293_v56 = vpop.eup %1292  ;;  %v1062_v61 = vsel %vm1055_vm6, %v1291_v58, 0.0 }
 0x409   :  { %v344_v53 = vmul.f32 0.6931472, %v1293_v56  ;;  %1063 = vadd.xlane.f32.xlu1 %v1062_v61 }
 0x40b   :  { %v345_v62 = vsub.f32 %v337_v38, %v344_v53 }
 0x40d   :  { %v346_v63 = vsel %vm77_vm3, %v345_v62, 0.0 }
 0x40e   :  { %347 = vst [vmem:[%s1663_s5] sm:$0x3] %v346_v63 }
 0x496   :  { %v1064_v24 = vpop.xlane.xlu1 %1063 }
 0x497   :  { %1294 = vlog2.f32 %v1064_v24 }
 0x4a1   :  { %v1295_v2 = vpop.eup %1294 }
 0x4a2   :  { %v1066_v3 = vmul.f32 0.6931472, %v1295_v2 }
 0x4a4   :  { %v1067_v4 = vsub.f32 %v1059_v52, %v1066_v3 }
 0x4a6   :  { %v1068_v50 = vsel %vm77_vm3, %v1067_v4, 0.0 }
 0x4a7   :  { %1069 = vst [vmem:[%s1663_s5 + $0x10] sm:$0xf] %v1068_v50 }
 0x4a8   :  { %1074 = vsyncpa [#allocation3], 1 }
 0x4a9   :  { %1075 = vsyncpa [#allocation5], 1 }
 0x4aa   :  { %1076 = vsyncpa [#allocation8], 1 }

</bundles_post_ra>
